<compile_context>
chip_gen: v6e
topology: v6e:2x2x1
jax: 0.10.0
libtpu: 0.0.40
codegen_flags: <defaults>
</compile_context>

<pallas_src>
import jax
import jax.numpy as jnp
from jax.experimental import pallas as pl
from jax.experimental.pallas import tpu as pltpu


# --------------------------------------------------------------------------
# Kernel
# --------------------------------------------------------------------------
def _rmsnorm_kernel(x_ref, w_ref, o_ref, *, eps, inv_hidden):
    # x_ref: (row_tile, hidden_p) tile of rows; w_ref: (1, hidden_p) weight
    # row (resident in VMEM across grid steps since its index_map is const).
    x = x_ref[...].astype(jnp.float32)                     # upcast like PyTorch
    # mean of squares over the TRUE hidden size (padded lanes are zero).
    ms = jnp.sum(x * x, axis=-1, keepdims=True) * inv_hidden
    inv = jax.lax.rsqrt(ms + eps)                          # EUP rsqrt
    # PyTorch casts back to the input dtype BEFORE the weight multiply.
    normed = (x * inv).astype(x_ref.dtype)
    # `weight * normed` in the promoted dtype (== o_ref.dtype).
    o_ref[...] = w_ref[...].astype(o_ref.dtype) * normed.astype(o_ref.dtype)


# --------------------------------------------------------------------------
# Sizing helpers
# --------------------------------------------------------------------------
def _round_up(v, m):
    return ((v + m - 1) // m) * m


def _default_vmem_limit_bytes():
    """Generation-aware scoped VMEM limit (~0.6x physical per TensorCore)."""
    phys = None
    try:
        info = pltpu.get_tpu_info()
        phys = getattr(info, "vmem_capacity_bytes", None)
    except Exception:
        phys = None
    if not phys:
        phys = 64 * 1024 * 1024  # assume the smallest (v7x per-TC) VMEM
    return int(phys * 0.6)


def _pick_row_tile(rows, hidden_p, in_itemsize, out_itemsize, vmem_limit_bytes):
    hbm_per_row = hidden_p * (in_itemsize + out_itemsize)
    total_hbm = rows * hbm_per_row

    # Truly tiny problem: one full-extent block; per-step overhead dominates
    # regardless, and a full-extent row dim is legal for any `rows`.
    if total_hbm < (1 << 20):
        return rows

    # VMEM budget: double-buffered in + out tiles, plus tile-sized f32
    # temporaries (upcast x and normed) when the input is sub-32-bit.
    f32_tmp_per_elem = 0 if in_itemsize >= 4 else 8
    per_row_vmem = hidden_p * (2 * in_itemsize + 2 * out_itemsize + f32_tmp_per_elem)
    budget = (vmem_limit_bytes * 2) // 3           # headroom for weight/scratch
    vmem_rows = max(8, budget // per_row_vmem)

    # HBM-traffic target: ~6 MiB moved per grid step keeps the ~0.35 us fixed
    # per-step overhead negligible even on v7x (3.2 TB/s HBM).
    target_rows = max(8, (6 << 20) // hbm_per_row)

    row_tile = min(vmem_rows, target_rows)

    # Guarantee >= 4 grid steps (>= 2 per TensorCore on v7x) so the pipeline
    # overlaps input DMA / compute / output DMA and both cores are fed.
    min_steps = 4
    if rows >= min_steps * 8:
        row_tile = min(row_tile, rows // min_steps)

    return max(8, (row_tile // 8) * 8)


# --------------------------------------------------------------------------
# Wrapper
# --------------------------------------------------------------------------
def rmsnorm(x, weight, eps=1e-6, *, row_tile=None, vmem_limit_bytes=None):
    """RMSNorm over the last axis of x; weight has shape (hidden,)."""
    orig_shape = x.shape
    hidden = orig_shape[-1]
    x2d = x.reshape(-1, hidden)
    rows = x2d.shape[0]

    # PyTorch: `weight * normed` promotes (e.g. f32 weight * bf16 normed -> f32).
    out_dtype = jnp.result_type(x.dtype, weight.dtype)

    # Lane-dense layout: pad hidden up to a multiple of 128 so the reduce and
    # the store use full vregs (no masked vst.msk partial stores). Padded
    # columns are zero in x (no effect on sum of squares) and zero in weight
    # (padded output columns are zero and sliced off). For production hidden
    # sizes (multiple of 128) this is a no-op.
    hidden_p = max(128, _round_up(hidden, 128))
    if hidden_p != hidden:
        x2d = jnp.pad(x2d, ((0, 0), (0, hidden_p - hidden)))
        w2d = jnp.pad(weight.reshape(1, hidden), ((0, 0), (0, hidden_p - hidden)))
    else:
        w2d = weight.reshape(1, hidden)

    if vmem_limit_bytes is None:
        vmem_limit_bytes = _default_vmem_limit_bytes()

    in_itemsize = jnp.dtype(x.dtype).itemsize
    out_itemsize = jnp.dtype(out_dtype).itemsize
    if row_tile is None:
        row_tile = _pick_row_tile(rows, hidden_p, in_itemsize, out_itemsize,
                                  vmem_limit_bytes)
    row_tile = int(min(row_tile, rows)) if row_tile >= rows else int(row_tile)

    grid = pl.cdiv(rows, row_tile)
    kernel = lambda xr, wr, orf: _rmsnorm_kernel(
        xr, wr, orf, eps=eps, inv_hidden=1.0 / float(hidden))

    out = pl.pallas_call(
        kernel,
        out_shape=jax.ShapeDtypeStruct((rows, hidden_p), out_dtype),
        grid_spec=pltpu.PrefetchScalarGridSpec(
            num_scalar_prefetch=0,
            grid=(grid,),
            in_specs=[
                pl.BlockSpec((row_tile, hidden_p), lambda i: (i, 0)),
                pl.BlockSpec((1, hidden_p), lambda i: (0, 0)),
            ],
            out_specs=pl.BlockSpec((row_tile, hidden_p), lambda i: (i, 0)),
        ),
        compiler_params=pltpu.CompilerParams(
            dimension_semantics=("parallel",),   # sharded across v7x's 2 TCs
            vmem_limit_bytes=int(vmem_limit_bytes),
        ),
    )(x2d, w2d)

    if hidden_p != hidden:
        out = out[:, :hidden]
    return out.reshape(orig_shape[:-1] + (hidden,))


# --------------------------------------------------------------------------
# Pure-JAX reference (mirrors the PyTorch module exactly)
# --------------------------------------------------------------------------
def rmsnorm_reference(x, weight, eps=1e-6):
    xf = x.astype(jnp.float32)
    var = jnp.mean(xf * xf, axis=-1, keepdims=True)
    normed = (xf * jax.lax.rsqrt(var + eps)).astype(x.dtype)
    out_dtype = jnp.result_type(x.dtype, weight.dtype)
    return weight.astype(out_dtype) * normed.astype(out_dtype)


if __name__ == "__main__":
    key = jax.random.PRNGKey(0)

    # 1) Small smoke test matching the module shapes (batch, seq, hidden).
    #    hidden=32 exercises the lane-padding path (padded to 128 lanes).
    batch, seq, hidden = 2, 8, 32
    x = jax.random.normal(key, (batch, seq, hidden), dtype=jnp.float32)
    weight = jnp.ones((hidden,), dtype=jnp.float32)  # nn.Parameter(torch.ones(H))

    out = jax.block_until_ready(rmsnorm(x, weight, eps=1e-6))
    ref = rmsnorm_reference(x, weight, eps=1e-6)
    assert out.shape == x.shape
    assert jnp.allclose(out, ref, atol=1e-5, rtol=1e-5)

    # 2) Multi-step grid with a masked partial last block (rows=128,
    #    row_tile=40 -> grid=4) and a lane-dense hidden (256).
    x2 = jax.random.normal(jax.random.PRNGKey(1), (2, 64, 256), dtype=jnp.float32)
    w2 = jax.random.normal(jax.random.PRNGKey(2), (256,), dtype=jnp.float32)
    out2 = jax.block_until_ready(rmsnorm(x2, w2, eps=1e-6, row_tile=40))
    ref2 = rmsnorm_reference(x2, w2, eps=1e-6)
    assert jnp.allclose(out2, ref2, atol=1e-5, rtol=1e-5)

    # 3) bf16 input with f32 weight (PyTorch-style promotion to f32 output),
    #    auto-sized tiles.
    x3 = jax.random.normal(jax.random.PRNGKey(3), (4, 128, 256)).astype(jnp.bfloat16)
    w3 = jax.random.normal(jax.random.PRNGKey(4), (256,), dtype=jnp.float32)
    out3 = jax.block_until_ready(rmsnorm(x3, w3, eps=1e-6))
    ref3 = rmsnorm_reference(x3, w3, eps=1e-6)
    assert out3.dtype == ref3.dtype
    assert jnp.allclose(out3.astype(jnp.float32), ref3.astype(jnp.float32),
                        atol=2e-2, rtol=2e-2)

    print("KERNEL_OK")
</pallas_src>

<mosaic_0001>
module attributes {stable_mosaic.version = 11 : i64} {
  func.func @_lambda_(%arg0: i32, %arg1: memref<16x128xf32, #tpu.memory_space<vmem>>, %arg2: memref<1x128xf32, #tpu.memory_space<vmem>>, %arg3: memref<16x128xf32, #tpu.memory_space<vmem>>) attributes {dimension_semantics = [#tpu.dimension_semantics<parallel>], iteration_bounds = array<i64: 1>, scalar_prefetch = 0 : i64, scratch_operands = 0 : i64, tpu.core_type = #tpu.core_type<tc>, window_params = [{transform_indices = @transform_0, window_bounds = array<i64: 16, 128>}, {pipeline_mode = #tpu.pipeline_mode<synchronous>, transform_indices = @transform_1, window_bounds = array<i64: 1, 128>}, {transform_indices = @transform_2, window_bounds = array<i64: 16, 128>}]} {
    %c0 = arith.constant 0 : index
    %c0_0 = arith.constant 0 : index
    %0 = vector.load %arg1[%c0, %c0_0] : memref<16x128xf32, #tpu.memory_space<vmem>>, vector<16x128xf32>
    %1 = arith.mulf %0, %0 : vector<16x128xf32>
    %cst = arith.constant dense<0.000000e+00> : vector<16xf32>
    %2 = vector.multi_reduction <add>, %1, %cst [1] : vector<16x128xf32> to vector<16xf32>
    %3 = vector.shape_cast %2 : vector<16xf32> to vector<16x1xf32>
    %cst_1 = arith.constant 3.125000e-02 : f32
    %4 = vector.broadcast %cst_1 : f32 to vector<16x1xf32>
    %5 = arith.mulf %3, %4 : vector<16x1xf32>
    %cst_2 = arith.constant 9.99999997E-7 : f32
    %6 = vector.broadcast %cst_2 : f32 to vector<16x1xf32>
    %7 = arith.addf %5, %6 : vector<16x1xf32>
    %8 = math.rsqrt %7 : vector<16x1xf32>
    %9 = vector.broadcast %8 : vector<16x1xf32> to vector<16x128xf32>
    %10 = arith.mulf %0, %9 : vector<16x128xf32>
    %c0_3 = arith.constant 0 : index
    %c0_4 = arith.constant 0 : index
    %11 = vector.load %arg2[%c0_3, %c0_4] : memref<1x128xf32, #tpu.memory_space<vmem>>, vector<1x128xf32>
    %12 = vector.broadcast %11 : vector<1x128xf32> to vector<16x128xf32>
    %13 = arith.mulf %12, %10 : vector<16x128xf32>
    %c0_5 = arith.constant 0 : index
    %c0_6 = arith.constant 0 : index
    %14 = vector.load %arg3[%c0_5, %c0_6] : memref<16x128xf32, #tpu.memory_space<vmem>>, vector<16x128xf32>
    tpu.vector_store %arg3[%c0_5, %c0_6], %13 {strides = array<i32>} : memref<16x128xf32, #tpu.memory_space<vmem>>, vector<16x128xf32>,
    return
  }
  func.func @transform_0(%arg0: i32) -> (i32, i32) {
    %c0_i32 = arith.constant 0 : i32
    %c0_i32_0 = arith.constant 0 : i32
    return %arg0, %c0_i32 : i32, i32
  }
  func.func @transform_1(%arg0: i32) -> (i32, i32) {
    %c0_i32 = arith.constant 0 : i32
    %c0_i32_0 = arith.constant 0 : i32
    %c0_i32_1 = arith.constant 0 : i32
    return %c0_i32, %c0_i32_0 : i32, i32
  }
  func.func @transform_2(%arg0: i32) -> (i32, i32) {
    %c0_i32 = arith.constant 0 : i32
    %c0_i32_0 = arith.constant 0 : i32
    return %arg0, %c0_i32 : i32, i32
  }
}

</mosaic_0001>

<bundles_post_ra>
// kernel: tpu_custom_call.1
= control target key start
LH: loop header
LB: loop body
LE: loop exit
PB: predicated region body
PF: predicated region fallthrough
CT: control target
= control target key end

     0   :  { %7 = vsyncpa [#allocation3], 0  ;;  %s157_s0 = inlined_call_operand.hbm [shape: f32[16,128], index: 0, kind: input, shape index: {}]   ;;  %s158_s1 = inlined_call_operand.vmem [shape: f32[1,128], index: 1, kind: input, shape index: {}]   ;;  %s159_s2 = inlined_call_operand.hbm [shape: f32[16,128], index: 2, kind: output, shape index: {}]  }
   0x1   :  { %8 = vsyncpa [#allocation4], 0  ;;  %s123_s9 = smov [#allocation2]  }
   0x2   :  { %s14_s10 = sshll.u32 %s123_s9, 4  ;;  %s15_s10 = int_to_ptr.vmem [resolvable:$true] %s14_s10 }
   0x3   :  { %s87_s11 = scalar_lea.vmem %s15_s10, 256  ;;  %p92_p1 = scmp.lt.s32.totalorder %s15_s10, %s15_s10 }
   0x4   :  { %p88_p0 = scmp.ne.s32.totalorder %s15_s10, %s87_s11  ;;  %p93_p2 = scmp.lt.s32.totalorder %s87_s11, %s87_s11 }
   0x6   :  { %p94_p3 = por %p93_p2, %p92_p1 }
   0x8   :  { %p95_p4 = pnand %p94_p3, %p88_p0 }
   0xa   :  { %98 = shalt.err (!%p95_p4)
}
   0xb   :  { %s124_s12 = smov 128   ;;  %s125_s13 = smov 8  }
   0xc   :  { %20 = dma.hbm_to_vmem [thread:$0]  %s157_s0, 256, %s15_s10, [#allocation3], %s124_s12, %s124_s12, %s125_s13  }
   0xd   :  { %119 = dma.done.wait [#allocation3], 256  }
   0xe   :  { %120 = vsyncadd [#allocation3], 4294967040  ;;  %v26_v0 = vld [vmem:[#allocation2] sm:$0xff]  ;;  %v27_v1 = vld [vmem:[#allocation2 + $0x8] sm:$0xff]  ;;  %s126_s0 = smov [#allocation5]  }
   0xf   :  { %v28_v2 = vmul.f32 %v26_v0, %v26_v0  ;;  %v29_v3 = vmul.f32 %v27_v1, %v27_v1  ;;  %v70_v11 = vld [vmem:[%s158_s1] ss:$0 sm:$0xff]  ;;  %s58_s18 = sshll.u32 %s126_s0, 4  ;;  %s59_s18 = int_to_ptr.vmem [resolvable:$true] %s58_s18 }
  0x10   :  { %s99_s19 = scalar_lea.vmem %s59_s18, 256  ;;  %p104_p6 = scmp.lt.s32.totalorder %s59_s18, %s59_s18 }
  0x11   :  { %30 = vadd.xlane.f32.xlu0 %v28_v2  ;;  %p100_p5 = scmp.ne.s32.totalorder %s59_s18, %s99_s19  ;;  %p105_p7 = scmp.lt.s32.totalorder %s99_s19, %s99_s19 }
  0x13   :  { %p106_p8 = por %p105_p7, %p104_p6 }
  0x15   :  { %32 = vadd.xlane.f32.xlu0 %v29_v3  ;;  %p107_p9 = pnand %p106_p8, %p100_p5 }
  0x9a   :  { %v31_v4 = vpop.xlane.xlu0 %30 }
  0x9b   :  { %v34_v5 = vmul.f32 0.03125, %v31_v4 }
  0x9d   :  { %v36_v6 = vadd.f32 1e-06, %v34_v5 }
  0x9e   :  { %v33_v7 = vpop.xlane.xlu0 %32 }
  0x9f   :  { %75 = vrsqrt.f32 %v36_v6  ;;  %v35_v8 = vmul.f32 0.03125, %v33_v7 }
  0xa1   :  { %v37_v9 = vadd.f32 1e-06, %v35_v8 }
  0xa3   :  { %77 = vrsqrt.f32 %v37_v9 }
  0xac   :  { %v76_v10 = vpop.eup %75 }
  0xad   :  { %v40_v12 = vmul.f32 %v76_v10, %v26_v0 }
  0xaf   :  { %v49_v13 = vmul.f32 %v70_v11, %v40_v12 }
  0xb0   :  { %v78_v14 = vpop.eup %77 }
  0xb1   :  { %v41_v15 = vmul.f32 %v78_v14, %v27_v1  ;;  %51 = vst [vmem:[#allocation5] sm:$0xff] %v49_v13 }
  0xb3   :  { %v50_v16 = vmul.f32 %v70_v11, %v41_v15 }
  0xb5   :  { %52 = vst [vmem:[#allocation5 + $0x8] sm:$0xff] %v50_v16 }
  0xb6   :  { %110 = shalt.err (!%p107_p9)
}
  0xb7   :  { %64 = dma.vmem_to_hbm [thread:$0]  %s59_s18, 256, %s159_s2, [#allocation4], %s124_s12, %s124_s12, %s125_s13  }
  0xb8   :  { %121 = dma.done.wait [#allocation4], 256  }
  0xb9   :  { %122 = vsyncadd [#allocation4], 4294967040 }
  0xba   :  { %68 = vsyncpa [#allocation3], 1 }
  0xbb   :  { %69 = vsyncpa [#allocation4], 1 }

</bundles_post_ra>
